<compile_context>
chip_gen: v7x
topology: tpu7x:2x2x1
jax: 0.10.0
libtpu: 0.0.40
codegen_flags: <defaults>
</compile_context>

<pallas_src>
import jax
import jax.numpy as jnp
from jax.experimental import pallas as pl
from jax.experimental.pallas import tpu as pltpu


def critic_forward(s, a, params, *, block_batch=256, compute_dtype=jnp.bfloat16):
    """Pallas implementation of Critic.forward(s, a)."""
    (w1, b1, w2, b2, w3, b3, w4, b4, w5, b5) = params

    B, ds = s.shape
    da = a.shape[1]
    h1 = w1.shape[1]
    h2 = w2.shape[1]
    h3 = w4.shape[1]
    assert w3.shape[1] == h2, "fc2 and fc3 must share an output width"
    assert h2 == h3, "Critic requires hidden_size2 == hidden_size3 (s + a residual)"
    assert w5.shape == (h3, 1)

    # ---- fold the fc2 / fc3 biases into one row (they are always summed).
    b23 = b2 + b3                                     # (1, h2)

    # ---- pack weights into one zero-padded slab, biases (+ fc5 row) into another.
    #      (In a real deployment this packing would be done once, not per call.)
    kmax = max(ds, h1, da, h3)
    nmax = max(h1, h2, h3)

    def _pad2(x):
        return jnp.pad(x, ((0, kmax - x.shape[0]), (0, nmax - x.shape[1])))

    def _pad_row(x):  # x is (1, n)
        return jnp.pad(x, ((0, 0), (0, nmax - x.shape[1])))

    w_slab = jnp.stack(
        [_pad2(w1), _pad2(w2), _pad2(w3), _pad2(w4)]
    ).astype(compute_dtype)                           # (4, kmax, nmax)
    # aux rows: [b1, b2+b3, b4, w5^T, b5] -- kept in f32 (bias / VPU math in f32).
    aux = jnp.concatenate(
        [_pad_row(b1), _pad_row(b23), _pad_row(b4), _pad_row(w5.T), _pad_row(b5)],
        axis=0,
    ).astype(jnp.float32)                             # (5, nmax)

    # ---- batch tiling
    if B <= block_batch:
        tb = B                        # single tile; block == full batch dim
    else:
        assert block_batch % 8 == 0, "batch tile must be a multiple of 8 sublanes"
        tb = block_batch
    grid = (pl.cdiv(B, tb),)

    def kernel(s_ref, a_ref, w_ref, aux_ref, out_ref):
        f32 = jnp.float32

        # Static slices out of the packed, VMEM-resident slabs.
        w1v = w_ref[0, :ds, :h1]
        w2v = w_ref[1, :h1, :h2]
        w3v = w_ref[2, :da, :h2]
        w4v = w_ref[3, :h3, :h3]

        b1v = aux_ref[0:1, :h1]
        b23v = aux_ref[1:2, :h2]
        b4v = aux_ref[2:3, :h3]
        w5v = aux_ref[3:4, :h3]        # fc5 weights as a lane row
        b5v = aux_ref[4:5, 0:1]        # fc5 bias scalar

        # fc1 + ReLU
        h = jnp.dot(s_ref[...].astype(compute_dtype), w1v,
                    preferred_element_type=f32) + b1v
        h = jnp.maximum(h, 0.0)

        # fc2(h) + fc3(a): two matmuls accumulated in f32 (no in-kernel concat).
        x = jnp.dot(h.astype(compute_dtype), w2v, preferred_element_type=f32)
        x = x + jnp.dot(a_ref[...].astype(compute_dtype), w3v,
                        preferred_element_type=f32)
        x = x + b23v

        # fc4 + ReLU
        x = jnp.dot(x.astype(compute_dtype), w4v,
                    preferred_element_type=f32) + b4v
        x = jnp.maximum(x, 0.0)

        # fc5 (output width 1): VPU multiply + lane reduction, not an MXU matmul.
        out_ref[...] = (jnp.sum(x * w5v, axis=-1, keepdims=True) + b5v
                        ).astype(out_ref.dtype)

    flops = 2 * B * (ds * h1 + h1 * h2 + da * h2 + h3 * h3 + h3)
    bytes_accessed = (
        s.size * 4 + a.size * 4 + B * 4
        + int(w_slab.size) * w_slab.dtype.itemsize + int(aux.size) * 4
    )

    return pl.pallas_call(
        kernel,
        out_shape=jax.ShapeDtypeStruct((B, 1), jnp.float32),
        grid=grid,
        in_specs=[
            pl.BlockSpec((tb, ds), lambda i: (i, 0)),
            pl.BlockSpec((tb, da), lambda i: (i, 0)),
            pl.BlockSpec((4, kmax, nmax), lambda i: (0, 0, 0)),  # weights stay resident
            pl.BlockSpec((5, nmax), lambda i: (0, 0)),           # biases stay resident
        ],
        out_specs=pl.BlockSpec((tb, 1), lambda i: (i, 0)),
        compiler_params=pltpu.CompilerParams(
            dimension_semantics=("parallel",)),
        cost_estimate=pl.CostEstimate(
            flops=flops, transcendentals=0, bytes_accessed=bytes_accessed),
    )(s, a, w_slab, aux)


def init_params(key, dim_state, dim_action, hidden_size):
    """Deterministic init mimicking PyTorch Linear default (uniform +/- 1/sqrt(fan_in))."""
    h1, h2, h3 = hidden_size
    assert h2 == h3, "Critic requires hidden_size2 == hidden_size3"

    def linear(key, fan_in, fan_out):
        kw, kb = jax.random.split(key)
        bound = 1.0 / jnp.sqrt(fan_in)
        w = jax.random.uniform(kw, (fan_in, fan_out), jnp.float32, -bound, bound)
        b = jax.random.uniform(kb, (1, fan_out), jnp.float32, -bound, bound)
        return w, b

    keys = jax.random.split(key, 5)
    w1, b1 = linear(keys[0], dim_state, h1)
    w2, b2 = linear(keys[1], h1, h2)
    w3, b3 = linear(keys[2], dim_action, h2)
    w4, b4 = linear(keys[3], h3, h3)
    w5, b5 = linear(keys[4], h3, 1)
    return (w1, b1, w2, b2, w3, b3, w4, b4, w5, b5)


def critic_reference(s, a, params):
    (w1, b1, w2, b2, w3, b3, w4, b4, w5, b5) = params
    h = jnp.maximum(s @ w1 + b1, 0.0)
    hs = h @ w2 + b2
    ha = a @ w3 + b3
    x = jnp.maximum((hs + ha) @ w4 + b4, 0.0)
    return x @ w5 + b5


if __name__ == "__main__":
    key = jax.random.PRNGKey(0)
    k_s, k_a, k_p = jax.random.split(key, 3)

    batch = 64
    dim_state = 16
    dim_action = 8
    hidden_size = [32, 64, 64]  # (h1, h2, h3); h2 == h3 as the module requires

    s = jax.random.normal(k_s, (batch, dim_state), jnp.float32)
    a = jax.random.normal(k_a, (batch, dim_action), jnp.float32)
    params = init_params(k_p, dim_state, dim_action, hidden_size)

    ref = critic_reference(s, a, params)

    # bf16 MXU operands + batch grid of 2 tiles (32 rows each).
    out_bf16 = jax.block_until_ready(
        critic_forward(s, a, params, block_batch=32, compute_dtype=jnp.bfloat16))
    assert out_bf16.shape == (batch, 1), out_bf16.shape
    assert jnp.allclose(out_bf16, ref, atol=3e-2, rtol=3e-2), (
        float(jnp.max(jnp.abs(out_bf16 - ref))))

    # Full-precision path, single batch tile.
    out_f32 = jax.block_until_ready(
        critic_forward(s, a, params, compute_dtype=jnp.float32))
    assert out_f32.shape == (batch, 1), out_f32.shape
    assert jnp.allclose(out_f32, ref, atol=1e-4, rtol=1e-4), (
        float(jnp.max(jnp.abs(out_f32 - ref))))

    print("KERNEL_OK")
</pallas_src>

<mosaic_0001>
module attributes {stable_mosaic.version = 11 : i64} {
  func.func @kernel(%arg0: i32, %arg1: memref<32x16xf32, #tpu.memory_space<vmem>>, %arg2: memref<32x8xf32, #tpu.memory_space<vmem>>, %arg3: memref<4x64x64xbf16, #tpu.memory_space<vmem>>, %arg4: memref<5x64xf32, #tpu.memory_space<vmem>>, %arg5: memref<32x1xf32, #tpu.memory_space<vmem>>) attributes {dimension_semantics = [#tpu.dimension_semantics<parallel>], iteration_bounds = array<i64: 2>, scalar_prefetch = 0 : i64, scratch_operands = 0 : i64, tpu.core_type = #tpu.core_type<tc>, window_params = [{transform_indices = @transform_0, window_bounds = array<i64: 32, 16>}, {transform_indices = @transform_1, window_bounds = array<i64: 32, 8>}, {pipeline_mode = #tpu.pipeline_mode<synchronous>, transform_indices = @transform_2, window_bounds = array<i64: 4, 64, 64>}, {pipeline_mode = #tpu.pipeline_mode<synchronous>, transform_indices = @transform_3, window_bounds = array<i64: 5, 64>}, {transform_indices = @transform_4, window_bounds = array<i64: 32, 1>}]} {
    %c0 = arith.constant 0 : index
    %c0_0 = arith.constant 0 : index
    %c0_1 = arith.constant 0 : index
    %0 = vector.load %arg3[%c0, %c0_0, %c0_1] : memref<4x64x64xbf16, #tpu.memory_space<vmem>>, vector<1x16x32xbf16>
    %1 = vector.shape_cast %0 : vector<1x16x32xbf16> to vector<16x32xbf16>
    %c1 = arith.constant 1 : index
    %c0_2 = arith.constant 0 : index
    %c0_3 = arith.constant 0 : index
    %2 = vector.load %arg3[%c1, %c0_2, %c0_3] : memref<4x64x64xbf16, #tpu.memory_space<vmem>>, vector<1x32x64xbf16>
    %3 = vector.shape_cast %2 : vector<1x32x64xbf16> to vector<32x64xbf16>
    %c2 = arith.constant 2 : index
    %c0_4 = arith.constant 0 : index
    %c0_5 = arith.constant 0 : index
    %4 = vector.load %arg3[%c2, %c0_4, %c0_5] : memref<4x64x64xbf16, #tpu.memory_space<vmem>>, vector<1x8x64xbf16>
    %5 = vector.shape_cast %4 : vector<1x8x64xbf16> to vector<8x64xbf16>
    %c3 = arith.constant 3 : index
    %c0_6 = arith.constant 0 : index
    %c0_7 = arith.constant 0 : index
    %6 = vector.load %arg3[%c3, %c0_6, %c0_7] : memref<4x64x64xbf16, #tpu.memory_space<vmem>>, vector<1x64x64xbf16>
    %7 = vector.shape_cast %6 : vector<1x64x64xbf16> to vector<64x64xbf16>
    %c0_8 = arith.constant 0 : index
    %c0_9 = arith.constant 0 : index
    %8 = vector.load %arg4[%c0_8, %c0_9] : memref<5x64xf32, #tpu.memory_space<vmem>>, vector<1x32xf32>
    %c1_10 = arith.constant 1 : index
    %c0_11 = arith.constant 0 : index
    %9 = vector.load %arg4[%c1_10, %c0_11] : memref<5x64xf32, #tpu.memory_space<vmem>>, vector<1x64xf32>
    %c2_12 = arith.constant 2 : index
    %c0_13 = arith.constant 0 : index
    %10 = vector.load %arg4[%c2_12, %c0_13] : memref<5x64xf32, #tpu.memory_space<vmem>>, vector<1x64xf32>
    %c3_14 = arith.constant 3 : index
    %c0_15 = arith.constant 0 : index
    %11 = vector.load %arg4[%c3_14, %c0_15] : memref<5x64xf32, #tpu.memory_space<vmem>>, vector<1x64xf32>
    %c4 = arith.constant 4 : index
    %c0_16 = arith.constant 0 : index
    %12 = vector.load %arg4[%c4, %c0_16] : memref<5x64xf32, #tpu.memory_space<vmem>>, vector<1x1xf32>
    %c0_17 = arith.constant 0 : index
    %c0_18 = arith.constant 0 : index
    %13 = vector.load %arg1[%c0_17, %c0_18] : memref<32x16xf32, #tpu.memory_space<vmem>>, vector<32x16xf32>
    %14 = arith.truncf %13 : vector<32x16xf32> to vector<32x16xbf16>
    %cst = arith.constant dense<0.000000e+00> : vector<32x32xf32>
    %15 = tpu.matmul %14, %1, %cst {dimension_numbers = #tpu.dot_dimension_numbers<[1], [0], [0], [1], [0, 0, 1, 1], [], []>} : vector<32x16xbf16>, vector<16x32xbf16>, vector<32x32xf32> -> vector<32x32xf32>
    %16 = vector.broadcast %8 : vector<1x32xf32> to vector<32x32xf32>
    %17 = arith.addf %15, %16 : vector<32x32xf32>
    %cst_19 = arith.constant 0.000000e+00 : f32
    %18 = vector.broadcast %cst_19 : f32 to vector<32x32xf32>
    %19 = arith.maximumf %17, %18 : vector<32x32xf32>
    %20 = arith.truncf %19 : vector<32x32xf32> to vector<32x32xbf16>
    %cst_20 = arith.constant dense<0.000000e+00> : vector<32x64xf32>
    %21 = tpu.matmul %20, %3, %cst_20 {dimension_numbers = #tpu.dot_dimension_numbers<[1], [0], [0], [1], [0, 0, 1, 1], [], []>} : vector<32x32xbf16>, vector<32x64xbf16>, vector<32x64xf32> -> vector<32x64xf32>
    %c0_21 = arith.constant 0 : index
    %c0_22 = arith.constant 0 : index
    %22 = vector.load %arg2[%c0_21, %c0_22] : memref<32x8xf32, #tpu.memory_space<vmem>>, vector<32x8xf32>
    %23 = arith.truncf %22 : vector<32x8xf32> to vector<32x8xbf16>
    %cst_23 = arith.constant dense<0.000000e+00> : vector<32x64xf32>
    %24 = tpu.matmul %23, %5, %cst_23 {dimension_numbers = #tpu.dot_dimension_numbers<[1], [0], [0], [1], [0, 0, 1, 1], [], []>} : vector<32x8xbf16>, vector<8x64xbf16>, vector<32x64xf32> -> vector<32x64xf32>
    %25 = arith.addf %21, %24 : vector<32x64xf32>
    %26 = vector.broadcast %9 : vector<1x64xf32> to vector<32x64xf32>
    %27 = arith.addf %25, %26 : vector<32x64xf32>
    %28 = arith.truncf %27 : vector<32x64xf32> to vector<32x64xbf16>
    %cst_24 = arith.constant dense<0.000000e+00> : vector<32x64xf32>
    %29 = tpu.matmul %28, %7, %cst_24 {dimension_numbers = #tpu.dot_dimension_numbers<[1], [0], [0], [1], [0, 0, 1, 1], [], []>} : vector<32x64xbf16>, vector<64x64xbf16>, vector<32x64xf32> -> vector<32x64xf32>
    %30 = vector.broadcast %10 : vector<1x64xf32> to vector<32x64xf32>
    %31 = arith.addf %29, %30 : vector<32x64xf32>
    %cst_25 = arith.constant 0.000000e+00 : f32
    %32 = vector.broadcast %cst_25 : f32 to vector<32x64xf32>
    %33 = arith.maximumf %31, %32 : vector<32x64xf32>
    %34 = vector.broadcast %11 : vector<1x64xf32> to vector<32x64xf32>
    %35 = arith.mulf %33, %34 : vector<32x64xf32>
    %cst_26 = arith.constant dense<0.000000e+00> : vector<32xf32>
    %36 = vector.multi_reduction <add>, %35, %cst_26 [1] : vector<32x64xf32> to vector<32xf32>
    %37 = vector.shape_cast %36 : vector<32xf32> to vector<32x1xf32>
    %38 = vector.broadcast %12 : vector<1x1xf32> to vector<32x1xf32>
    %39 = arith.addf %37, %38 : vector<32x1xf32>
    %c0_27 = arith.constant 0 : index
    %c0_28 = arith.constant 0 : index
    %40 = vector.load %arg5[%c0_27, %c0_28] : memref<32x1xf32, #tpu.memory_space<vmem>>, vector<32x1xf32>
    tpu.vector_store %arg5[%c0_27, %c0_28], %39 {strides = array<i32>} : memref<32x1xf32, #tpu.memory_space<vmem>>, vector<32x1xf32>,
    return
  }
  func.func @transform_0(%arg0: i32) -> (i32, i32) {
    %c0_i32 = arith.constant 0 : i32
    %c0_i32_0 = arith.constant 0 : i32
    return %arg0, %c0_i32 : i32, i32
  }
  func.func @transform_1(%arg0: i32) -> (i32, i32) {
    %c0_i32 = arith.constant 0 : i32
    %c0_i32_0 = arith.constant 0 : i32
    return %arg0, %c0_i32 : i32, i32
  }
  func.func @transform_2(%arg0: i32) -> (i32, i32, i32) {
    %c0_i32 = arith.constant 0 : i32
    %c0_i32_0 = arith.constant 0 : i32
    %c0_i32_1 = arith.constant 0 : i32
    %c0_i32_2 = arith.constant 0 : i32
    return %c0_i32, %c0_i32_0, %c0_i32_1 : i32, i32, i32
  }
  func.func @transform_3(%arg0: i32) -> (i32, i32) {
    %c0_i32 = arith.constant 0 : i32
    %c0_i32_0 = arith.constant 0 : i32
    %c0_i32_1 = arith.constant 0 : i32
    return %c0_i32, %c0_i32_0 : i32, i32
  }
  func.func @transform_4(%arg0: i32) -> (i32, i32) {
    %c0_i32 = arith.constant 0 : i32
    %c0_i32_0 = arith.constant 0 : i32
    return %arg0, %c0_i32 : i32, i32
  }
}

</mosaic_0001>

<bundles_post_ra>
// kernel: tpu_custom_call.1
= control target key start
LH: loop header
LB: loop body
LE: loop exit
PB: predicated region body
PF: predicated region fallthrough
CT: control target
= control target key end

     0   :  { %s805_s15 = smov 0   ;;  %s875_s0 = inlined_call_operand.vmem [shape: f32[64,16], index: 0, kind: input, shape index: {}]   ;;  %s876_s1 = inlined_call_operand.vmem [shape: f32[64,8], index: 1, kind: input, shape index: {}]   ;;  %s877_s2 = inlined_call_operand.vmem [shape: bf16[4,64,64], index: 2, kind: input, shape index: {}]   ;;  %s878_s3 = inlined_call_operand.vmem [shape: f32[5,64], index: 3, kind: input, shape index: {}]   ;;  %s879_s4 = inlined_call_operand.vmem [shape: f32[64,1], index: 4, kind: output, shape index: {}]  }
   0x1 LB: > { %s658_s16 = sadd.s32 4294967295, %s778_s15   ;;  %p662_p0 = scmp.ge.s32.totalorder %s778_s15, 1  ;;  %s778_s15 = sphi %s805_s15, %s14_s15  }
   0x2   : > { %p174_p1 = scmp.lt.s32.totalorder %s778_s15, 3 }
   0x4   : > { %p175_p2 = pnand %p662_p0, %p174_p1 }
   0x5   : > { %v765_v0 = vld [vmem:[%s877_s2] sm:$0xff] (!%p175_p2)   ;;  %s663_s19 = sshll.u32 (!%p175_p2), %s658_s16, 2  ;;  %vm338_vm0 = vcmask (!%p175_p2), 1043456   ;;  %vm263_vm1 = vcmask (!%p175_p2), 130048   ;;  %vm331_vm2 = vcmask (!%p175_p2), 64512   ;;  %v767_v16 = vld [vmem:[%s877_s2 + $0x28] sm:$0xff] (!%p175_p2)  }
   0x6   : > { %178 = sbr.rel (%p175_p2) target bundleno = 831 (0x33f), region = 36  ;;  %p206_p3 = scmp.lt.s32.totalorder (!%p175_p2), %s663_s19, 7  ;;  %v673_v1 = vld [vmem:[%s877_s2 + $0x40] sm:$0xf] (!%p175_p2)  ;;  %720 = vmatprep.subr.bf16.mxu0 (!%p175_p2), %v765_v0  ;;  %v769_v18 = vld [vmem:[%s877_s2 + $0x68] sm:$0xff] (!%p175_p2)   ;;  %vm403_vm3 = vcmask (!%p175_p2), 261120  }
   0x7   : > { %756 = vmatprep.subr.msk.bf16.mxu1 (!%p175_p2), %vm338_vm0, %v673_v1  ;;  %v340_v2 = vsel (!%p175_p2), %vm338_vm0, %v673_v1, 0  ;;  %v766_v3 = vld [vmem:[%s877_s2 + $0x20] sm:$0xff] (!%p175_p2)   ;;  %721 = vmatpush3.bf16.msra.mxu0 (!%p175_p2), %v765_v0  ;;  %v770_v34 = vld [vmem:[%s877_s2 + $0x70] sm:$0xff] (!%p175_p2)   ;;  %v771_v35 = vld [vmem:[%s877_s2 + $0x78] sm:$0xff] (!%p175_p2)   ;;  %vm497_vm4 = vcmask (!%p175_p2), 523264   ;;  %vm585_vm5 = vcmask (!%p175_p2), 7168  }
   0x8   : > { %727 = vmatpush3.bf16.msra.mxu1 (!%p175_p2), %v340_v2  ;;  %v768_v17 = vld [vmem:[%s877_s2 + $0x60] sm:$0xff] (!%p175_p2)  }
   0x9   : > { %732 = vmatprep.subr.bf16.mxu1 (!%p175_p2), %v766_v3  ;;  %740 = vmatprep.subr.bf16.mxu0 (!%p175_p2), %v768_v17  ;;  %v682_v19 = vld [vmem:[%s878_s3] ss:$0 sm:$0xff] (!%p175_p2)  ;;  %v692_v36 = vld [vmem:[%s878_s3 + $0x1] ss:$0 sm:$0xff] (!%p175_p2)  ;;  %v693_v47 = vld [vmem:[%s878_s3 + $0x2] ss:$0 sm:$0xff] (!%p175_p2) }
   0xa   : > { %v700_v53 = vld [vmem:[%s878_s3 + $0x3] ss:$0 sm:$0xff] (!%p175_p2) }
   0xd   : > { %s881_s19 = smov (!%p206_p3, %s663_s19), 7 }
   0xe   : > { %s822_s24 = sshll.u32 %s881_s19, 3 }
   0xf   : > { %s209_s27 = scalar_lea.vmem %s875_s0, %s822_s24  ;;  %s215_s30 = scalar_lea.vmem %s876_s1, %s822_s24 }
  0x10   : > { %v247_v4 = vld [vmem:[%s209_s27] sm:$0xff]  ;;  %v248_v5 = vld [vmem:[%s209_s27 + $0x8] sm:$0xff]  ;;  %v249_v6 = vld [vmem:[%s209_s27 + $0x10] sm:$0xff]  ;;  %s221_s29 = scalar_lea.vmem %s879_s4, %s822_s24 }
  0x11   : > { %v251_v7 = vpack.c.bf16 %v248_v5, %v247_v4  ;;  %v250_v8 = vld [vmem:[%s209_s27 + $0x18] sm:$0xff]  ;;  %v325_v9 = vld [vmem:[%s215_s30] sm:$0xff]  ;;  %v326_v10 = vld [vmem:[%s215_s30 + $0x8] sm:$0xff] }
  0x12   : > { %v252_v11 = vpack.c.bf16 %v250_v8, %v249_v6  ;;  %v329_v12 = vpack.c.bf16 %v326_v10, %v325_v9  ;;  %v327_v13 = vld [vmem:[%s215_s30 + $0x10] sm:$0xff]  ;;  %v328_v14 = vld [vmem:[%s215_s30 + $0x18] sm:$0xff]  ;;  %v701_v5 = vld [vmem:[%s878_s3 + $0x4] ss:$0 sm:$0xff] }
  0x13   : > { %722 = vmatprep.mubr.msk.bf16.mxu0 %vm263_vm1, %v251_v7  ;;  %v330_v15 = vpack.c.bf16 %v328_v14, %v327_v13 }
  0x14   : > { %723 = vmatmul.mubr.msk.bf16.vlgmr.msra.gmra.mrb[0].mxu0 %vm263_vm1, %v252_v11  ;;  %728 = vmatprep.mubr.msk.bf16.mxu1 %vm331_vm2, %v329_v12 }
  0x15   : > { %729 = vmatmul.mubr.msk.bf16.vlgmr.msra.gmra.mrb[0].mxu1 %vm331_vm2, %v330_v15  ;;  %741 = vmatpush3.bf16.msra.mxu0 %v768_v17 }
  0x16   : > { %733 = vmatpush3.bf16.msra.mxu1 %v766_v3  ;;  %742 = vmatprep.subr.bf16.mxu0 %v769_v18 }
  0x17   : > { %734 = vmatprep.subr.bf16.mxu1 %v767_v16 }
  0x19   : > { %743 = vmatpush3.bf16.msra.mxu0 %v769_v18 }
  0x1a   : > { %735 = vmatpush3.bf16.msra.mxu1 %v767_v16  ;;  %744 = vmatprep.subr.bf16.mxu0 %v770_v34 }
  0x1d   : > { %745 = vmatpush3.bf16.msra.mxu0 %v770_v34 }
  0x1e   : > { %746 = vmatprep.subr.bf16.mxu0 %v771_v35 }
  0x21   : > { %747 = vmatpush3.bf16.msra.mxu0 %v771_v35 }
  0xe7   : > { %v724_v20 = vpop.f32.mrb[0].mxu0 }
  0xe8   : > { %v313_v21 = vadd.f32 %v724_v20, %v682_v19  ;;  %v304_v22 = vpop.f32.mrb[1].mxu0 }
  0xe9   : > { %v305_v23 = vadd.f32 %v682_v19, %v304_v22  ;;  %v725_v24 = vpop.f32.mrb[2].mxu0 }
  0xea   : > { %v316_v25 = vadd.f32 %v725_v24, %v682_v19  ;;  %v307_v26 = vpop.f32.mrb[3].mxu0  ;;  %v321_v28 = vmax.f32 %v313_v21, 0.0 }
  0xeb   : > { %v308_v27 = vadd.f32 %v682_v19, %v307_v26  ;;  %v319_v30 = vmax.f32 %v305_v23, 0.0 }
  0xec   : > { %v322_v29 = vmax.f32 %v316_v25, 0.0 }
  0xed   : > { %v320_v31 = vmax.f32 %v308_v27, 0.0 }
  0xee   : > { %v324_v32 = vpack.c.bf16 %v322_v29, %v321_v28 }
  0xef   : > { %v323_v33 = vpack.c.bf16 %v320_v31, %v319_v30 }
  0xf1   : > { %736 = vmatprep.mubr.msk.bf16.mxu1 %vm403_vm3, %v323_v33 }
  0xf2   : > { %737 = vmatmul.mubr.msk.bf16.vlgmr.msra.gmra.mrb[0].mxu1 %vm403_vm3, %v324_v32 }
 0x1c5   : > { %v738_v37 = vpop.f32.mrb[0].mxu1 }
 0x1c6   : > { %v444_v38 = vpop.f32.mrb[1].mxu1  ;;  %v465_v40 = vadd.f32 %v738_v37, %v692_v36 }
 0x1c7   : > { %v739_v39 = vpop.f32.mrb[2].mxu1  ;;  %v463_v43 = vadd.f32 %v692_v36, %v444_v38 }
 0x1c8   : > { %v466_v41 = vadd.f32 %v739_v39, %v692_v36  ;;  %v447_v42 = vpop.f32.mrb[3].mxu1 }
 0x1c9   : > { %v464_v44 = vadd.f32 %v692_v36, %v447_v42 }
 0x1ca   : > { %v468_v45 = vpack.c.bf16 %v466_v41, %v465_v40 }
 0x1cb   : > { %v467_v46 = vpack.c.bf16 %v464_v44, %v463_v43 }
 0x1cd   : > { %748 = vmatprep.mubr.msk.bf16.mxu0 %vm497_vm4, %v467_v46 }
 0x1ce   : > { %749 = vmatmul.mubr.msk.bf16.vlgmr.msra.gmra.mrb[4].mxu0 %vm497_vm4, %v468_v45 }
 0x2a1   : > { %v750_v48 = vpop.f32.mrb[4].mxu0 }
 0x2a2   : > { %v547_v49 = vadd.f32 %v750_v48, %v693_v47  ;;  %v538_v50 = vpop.f32.mrb[5].mxu0 }
 0x2a3   : > { %v539_v51 = vadd.f32 %v693_v47, %v538_v50  ;;  %v751_v52 = vpop.f32.mrb[6].mxu0 }
 0x2a4   : > { %v555_v54 = vmax.f32 %v547_v49, 0.0  ;;  %v550_v55 = vadd.f32 %v751_v52, %v693_v47  ;;  %v541_v56 = vpop.f32.mrb[7].mxu0 }
 0x2a5   : > { %v553_v57 = vmax.f32 %v539_v51, 0.0  ;;  %v542_v58 = vadd.f32 %v693_v47, %v541_v56 }
 0x2a6   : > { %v556_v59 = vmax.f32 %v550_v55, 0.0  ;;  %v563_v60 = vmul.f32 %v700_v53, %v555_v54 }
 0x2a7   : > { %v554_v61 = vmax.f32 %v542_v58, 0.0  ;;  %v561_v62 = vmul.f32 %v700_v53, %v553_v57 }
 0x2a8   : > { %v571_v63 = vsel %vm497_vm4, %v563_v60, 0.0  ;;  %v564_v0 = vmul.f32 %v700_v53, %v556_v59 }
 0x2a9   : > { %572 = vadd.xlane.f32.xlu1 %v571_v63  ;;  %v565_v1 = vsel %vm497_vm4, %v561_v62, 0.0  ;;  %v562_v2 = vmul.f32 %v700_v53, %v554_v61 }
 0x2aa   : > { %566 = vadd.xlane.f32.xlu0 %v565_v1  ;;  %v574_v3 = vsel %vm497_vm4, %v564_v0, 0.0 }
 0x2ab   : > { %v568_v4 = vsel %vm497_vm4, %v562_v2, 0.0 }
 0x2ad   : > { %575 = vadd.xlane.f32.xlu1 %v574_v3 }
 0x2ae   : > { %569 = vadd.xlane.f32.xlu0 %v568_v4 }
 0x336   : > { %v573_v6 = vpop.xlane.xlu1 %572 }
 0x337   : > { %v567_v7 = vpop.xlane.xlu0 %566  ;;  %v583_v12 = vadd.f32 %v701_v5, %v573_v6 }
 0x338   : > { %v581_v8 = vadd.f32 %v701_v5, %v567_v7 }
 0x339   : > { %588 = vst.msk [vmem:[%s221_s29 + $0x10] sm:$0xff] %vm585_vm5, %v583_v12 }
 0x33a   : > { %586 = vst.msk [vmem:[%s221_s29] sm:$0xff] %vm585_vm5, %v581_v8  ;;  %v576_v9 = vpop.xlane.xlu1 %575 }
 0x33b   : > { %v570_v10 = vpop.xlane.xlu0 %569  ;;  %v584_v13 = vadd.f32 %v701_v5, %v576_v9 }
 0x33c   : > { %v582_v11 = vadd.f32 %v701_v5, %v570_v10 }
 0x33d   : > { %589 = vst.msk [vmem:[%s221_s29 + $0x18] sm:$0xff] %vm585_vm5, %v584_v13 }
 0x33e   : > { %587 = vst.msk [vmem:[%s221_s29 + $0x8] sm:$0xff] %vm585_vm5, %v582_v11 }
 0x33f PF: > { %s14_s15 = sadd.s32 1, %s778_s15  }
 0x340   : > { %p11_p4 = scmp.ge.s32.totalorder %s14_s15, 4  }
 0x342   :  { %13 = sbr.rel (!%p11_p4) target bundleno = 1 (0x1), region = 72 }

</bundles_post_ra>
